<compile_context>
chip_gen: v7x
topology: tpu7x:2x2x1
jax: 0.10.0
libtpu: 0.0.40
codegen_flags: <defaults>
</compile_context>

<pallas_src>
import functools

import jax
import jax.numpy as jnp
from jax.experimental import pallas as pl
from jax.experimental.pallas import tpu as pltpu

_LANES = 128
_MIN_SUBLANES = 8


def _softmax_gauss_kernel(mean_ref, var_ref, out_mean_ref, out_var_ref, *, eps):
    # Block shape: (1, C, TR, 128). Channel axis (the softmax dim) is a leading
    # block dim, so the reduction over it is plain full-vreg VPU adds.
    m = mean_ref[...]
    v = var_ref[...]

    lg_mean = jnp.exp(m + 0.5 * v)                      # exp(mu + 0.5*sigma^2)
    # exp(2*(mu+0.5*var)) == lg_mean**2: reuse the exp (2 transcendentals/elem).
    # TODO(synk): jnp.expm1(v) is more accurate for small variances, but we keep
    # exp(v)-1 for fidelity with the PyTorch reference formulation.
    lg_var = (lg_mean * lg_mean) * (jnp.exp(v) - 1.0)

    # Reduce over channels (axis=1), keepdims to broadcast back.
    constant = jnp.sum(lg_mean, axis=1, keepdims=True) + eps    # (1,1,TR,128)
    inv = 1.0 / constant                # one exact reciprocal / spatial element
    inv2 = inv * inv

    out_mean_ref[...] = lg_mean * inv
    out_var_ref[...] = lg_var * inv2


def _cdiv(a, b):
    return -(-a // b)


def _round_up(a, b):
    return _cdiv(a, b) * b


def _vmem_capacity_bytes():
    try:
        return int(pltpu.get_tpu_info().vmem_capacity_bytes)
    except Exception:
        return 64 * 1024 * 1024          # conservative (v7x-sized) fallback


def _default_block_bytes():
    """Per-stream block budget derived from the device's VMEM capacity."""
    vmem = _vmem_capacity_bytes()
    # Real footprint ~= 4 streams x 2 buffers x block + ~3 block-sized
    # compiler temporaries (lg_mean / lg_var / constant) ~= 11-12 x block.
    budget = min(48 * 1024 * 1024, (vmem * 5) // 8)   # v7x(64M): 40M, v5e/v6e: 48M
    return max(64 * 1024, budget // 12)               # ~3.3-4 MiB per stream


def _pick_row_tile(num_rows, c, itemsize, max_block_bytes, batch):
    """Pick a tile size along the (HW//128) axis.

    Multiple of 8 (Mosaic (8,128) block constraint); partial last tiles are
    handled via cdiv padding. If num_rows <= 8 the full extent is used.
    """
    if num_rows <= _MIN_SUBLANES:
        return num_rows                                   # full extent: legal
    bytes_per_row = c * _LANES * itemsize
    cap = (max_block_bytes // bytes_per_row) // _MIN_SUBLANES * _MIN_SUBLANES
    cap = max(_MIN_SUBLANES, cap)
    tr = min(cap, _round_up(num_rows, _MIN_SUBLANES))

    # v7x megacore: with an odd batch, try to make the number of spatial tiles
    # even so the total ("parallel" x "parallel") grid splits across both TCs.
    if batch % 2 == 1:
        t = tr
        while t >= _MIN_SUBLANES:
            if _cdiv(num_rows, t) % 2 == 0:
                return t
            t -= _MIN_SUBLANES
    return tr


def softmax_gaussian(features_mean, features_variance, eps=1e-5,
                     max_block_bytes=None):
    """features_mean / features_variance: (N, C, H, W) float32. Softmax over dim=1."""
    N, C, H, W = features_mean.shape
    HW = H * W
    assert HW % _LANES == 0, "flattened spatial dim must be a multiple of 128"
    R = HW // _LANES

    dtype = features_mean.dtype
    itemsize = jnp.dtype(dtype).itemsize
    if max_block_bytes is None:
        max_block_bytes = _default_block_bytes()

    TR = _pick_row_tile(R, C, itemsize, max_block_bytes, N)
    num_tiles = _cdiv(R, TR)

    block_bytes = C * TR * _LANES * itemsize
    # Explicit scoped-VMEM limit sized to the actual footprint (double-buffered
    # streams + block-sized temporaries), clamped below physical VMEM.
    vmem_limit = int(min(_vmem_capacity_bytes() - 8 * 1024 * 1024,
                         max(32 * 1024 * 1024,
                             14 * block_bytes + 4 * 1024 * 1024)))

    mean4 = features_mean.reshape(N, C, R, _LANES)
    var4 = features_variance.reshape(N, C, R, _LANES)

    kernel = functools.partial(_softmax_gauss_kernel, eps=eps)

    block = pl.BlockSpec((1, C, TR, _LANES), lambda n, t: (n, 0, t, 0))

    out_mean, out_var = pl.pallas_call(
        kernel,
        out_shape=(
            jax.ShapeDtypeStruct((N, C, R, _LANES), dtype),
            jax.ShapeDtypeStruct((N, C, R, _LANES), features_variance.dtype),
        ),
        grid_spec=pltpu.PrefetchScalarGridSpec(
            num_scalar_prefetch=0,
            grid=(N, num_tiles),
            in_specs=[block, block],
            out_specs=[
                pl.BlockSpec((1, C, TR, _LANES), lambda n, t: (n, 0, t, 0)),
                pl.BlockSpec((1, C, TR, _LANES), lambda n, t: (n, 0, t, 0)),
            ],
        ),
        compiler_params=pltpu.CompilerParams(
            dimension_semantics=("parallel", "parallel"),
            vmem_limit_bytes=vmem_limit,
        ),
    )(mean4, var4)

    return out_mean.reshape(N, C, H, W), out_var.reshape(N, C, H, W)


def _reference(features_mean, features_variance, eps=1e-5):
    log_gaussian_mean = features_mean + 0.5 * features_variance
    log_gaussian_variance = 2 * log_gaussian_mean
    log_gaussian_mean = jnp.exp(log_gaussian_mean)
    log_gaussian_variance = jnp.exp(log_gaussian_variance)
    log_gaussian_variance = log_gaussian_variance * (jnp.exp(features_variance) - 1)
    constant = jnp.sum(log_gaussian_mean, axis=1, keepdims=True) + eps
    outputs_mean = log_gaussian_mean / constant
    outputs_variance = log_gaussian_variance / constant ** 2
    return outputs_mean, outputs_variance


def _check(mean, var, **kw):
    out_mean, out_var = softmax_gaussian(mean, var, **kw)
    jax.block_until_ready((out_mean, out_var))
    ref_mean, ref_var = _reference(mean, var)
    assert jnp.allclose(out_mean, ref_mean, atol=1e-5, rtol=1e-5)
    assert jnp.allclose(out_var, ref_var, atol=1e-5, rtol=1e-5)


if __name__ == "__main__":
    key = jax.random.PRNGKey(0)
    k1, k2, k3, k4, k5, k6 = jax.random.split(key, 6)

    # Small shape consistent with the module (dim=1 softmax over channels).
    N, C, H, W = 2, 4, 16, 16
    features_mean = jax.random.normal(k1, (N, C, H, W), dtype=jnp.float32)
    # variances must be non-negative
    features_variance = jax.nn.softplus(
        jax.random.normal(k2, (N, C, H, W), dtype=jnp.float32)
    )
    _check(features_mean, features_variance)

    # Exercise the cdiv / partial-block spatial path (R = 15, tiny VMEM budget
    # forces TR = 8 -> 2 tiles, last one padded).
    N2, C2, H2, W2 = 2, 4, 24, 80
    fm2 = jax.random.normal(k3, (N2, C2, H2, W2), dtype=jnp.float32)
    fv2 = jax.nn.softplus(jax.random.normal(k4, (N2, C2, H2, W2), dtype=jnp.float32))
    _check(fm2, fv2, max_block_bytes=C2 * _LANES * _MIN_SUBLANES * 4)

    # Exercise the odd-batch / even-grid (v7x megacore balance) path.
    N3, C3, H3, W3 = 1, 4, 32, 64
    fm3 = jax.random.normal(k5, (N3, C3, H3, W3), dtype=jnp.float32)
    fv3 = jax.nn.softplus(jax.random.normal(k6, (N3, C3, H3, W3), dtype=jnp.float32))
    _check(fm3, fv3)

    print("KERNEL_OK")
</pallas_src>

<mosaic_0001>
module attributes {stable_mosaic.version = 11 : i64} {
  func.func @_softmax_gauss_kernel(%arg0: i32, %arg1: i32, %arg2: memref<1x4x2x128xf32, #tpu.memory_space<vmem>>, %arg3: memref<1x4x2x128xf32, #tpu.memory_space<vmem>>, %arg4: memref<1x4x2x128xf32, #tpu.memory_space<vmem>>, %arg5: memref<1x4x2x128xf32, #tpu.memory_space<vmem>>) attributes {dimension_semantics = [#tpu.dimension_semantics<parallel>, #tpu.dimension_semantics<parallel>], iteration_bounds = array<i64: 2, 1>, scalar_prefetch = 0 : i64, scratch_operands = 0 : i64, tpu.core_type = #tpu.core_type<tc>, window_params = [{transform_indices = @transform_0, window_bounds = array<i64: 1, 4, 2, 128>}, {transform_indices = @transform_1, window_bounds = array<i64: 1, 4, 2, 128>}, {transform_indices = @transform_2, window_bounds = array<i64: 1, 4, 2, 128>}, {transform_indices = @transform_3, window_bounds = array<i64: 1, 4, 2, 128>}]} {
    %c0 = arith.constant 0 : index
    %c0_0 = arith.constant 0 : index
    %c0_1 = arith.constant 0 : index
    %c0_2 = arith.constant 0 : index
    %0 = vector.load %arg2[%c0, %c0_0, %c0_1, %c0_2] : memref<1x4x2x128xf32, #tpu.memory_space<vmem>>, vector<1x4x2x128xf32>
    %c0_3 = arith.constant 0 : index
    %c0_4 = arith.constant 0 : index
    %c0_5 = arith.constant 0 : index
    %c0_6 = arith.constant 0 : index
    %1 = vector.load %arg3[%c0_3, %c0_4, %c0_5, %c0_6] : memref<1x4x2x128xf32, #tpu.memory_space<vmem>>, vector<1x4x2x128xf32>
    %cst = arith.constant 5.000000e-01 : f32
    %2 = vector.broadcast %cst : f32 to vector<1x4x2x128xf32>
    %3 = arith.mulf %2, %1 : vector<1x4x2x128xf32>
    %4 = arith.addf %0, %3 : vector<1x4x2x128xf32>
    %5 = math.exp %4 : vector<1x4x2x128xf32>
    %6 = arith.mulf %5, %5 : vector<1x4x2x128xf32>
    %7 = math.exp %1 : vector<1x4x2x128xf32>
    %cst_7 = arith.constant 1.000000e+00 : f32
    %8 = vector.broadcast %cst_7 : f32 to vector<1x4x2x128xf32>
    %9 = arith.subf %7, %8 : vector<1x4x2x128xf32>
    %10 = arith.mulf %6, %9 : vector<1x4x2x128xf32>
    %cst_8 = arith.constant dense<0.000000e+00> : vector<1x2x128xf32>
    %11 = vector.multi_reduction <add>, %5, %cst_8 [1] : vector<1x4x2x128xf32> to vector<1x2x128xf32>
    %12 = vector.shape_cast %11 : vector<1x2x128xf32> to vector<1x1x2x128xf32>
    %cst_9 = arith.constant 9.99999974E-6 : f32
    %13 = vector.broadcast %cst_9 : f32 to vector<1x1x2x128xf32>
    %14 = arith.addf %12, %13 : vector<1x1x2x128xf32>
    %cst_10 = arith.constant 1.000000e+00 : f32
    %15 = vector.broadcast %cst_10 : f32 to vector<1x1x2x128xf32>
    %16 = arith.divf %15, %14 : vector<1x1x2x128xf32>
    %17 = arith.mulf %16, %16 : vector<1x1x2x128xf32>
    %18 = vector.broadcast %16 : vector<1x1x2x128xf32> to vector<1x4x2x128xf32>
    %19 = arith.mulf %5, %18 : vector<1x4x2x128xf32>
    %c0_11 = arith.constant 0 : index
    %c0_12 = arith.constant 0 : index
    %c0_13 = arith.constant 0 : index
    %c0_14 = arith.constant 0 : index
    %20 = vector.load %arg4[%c0_11, %c0_12, %c0_13, %c0_14] : memref<1x4x2x128xf32, #tpu.memory_space<vmem>>, vector<1x4x2x128xf32>
    tpu.vector_store %arg4[%c0_11, %c0_12, %c0_13, %c0_14], %19 {strides = array<i32>} : memref<1x4x2x128xf32, #tpu.memory_space<vmem>>, vector<1x4x2x128xf32>,
    %21 = vector.broadcast %17 : vector<1x1x2x128xf32> to vector<1x4x2x128xf32>
    %22 = arith.mulf %10, %21 : vector<1x4x2x128xf32>
    %c0_15 = arith.constant 0 : index
    %c0_16 = arith.constant 0 : index
    %c0_17 = arith.constant 0 : index
    %c0_18 = arith.constant 0 : index
    %23 = vector.load %arg5[%c0_15, %c0_16, %c0_17, %c0_18] : memref<1x4x2x128xf32, #tpu.memory_space<vmem>>, vector<1x4x2x128xf32>
    tpu.vector_store %arg5[%c0_15, %c0_16, %c0_17, %c0_18], %22 {strides = array<i32>} : memref<1x4x2x128xf32, #tpu.memory_space<vmem>>, vector<1x4x2x128xf32>,
    return
  }
  func.func @transform_0(%arg0: i32, %arg1: i32) -> (i32, i32, i32, i32) {
    %c0_i32 = arith.constant 0 : i32
    %c0_i32_0 = arith.constant 0 : i32
    %c0_i32_1 = arith.constant 0 : i32
    return %arg0, %c0_i32, %arg1, %c0_i32_0 : i32, i32, i32, i32
  }
  func.func @transform_1(%arg0: i32, %arg1: i32) -> (i32, i32, i32, i32) {
    %c0_i32 = arith.constant 0 : i32
    %c0_i32_0 = arith.constant 0 : i32
    %c0_i32_1 = arith.constant 0 : i32
    return %arg0, %c0_i32, %arg1, %c0_i32_0 : i32, i32, i32, i32
  }
  func.func @transform_2(%arg0: i32, %arg1: i32) -> (i32, i32, i32, i32) {
    %c0_i32 = arith.constant 0 : i32
    %c0_i32_0 = arith.constant 0 : i32
    %c0_i32_1 = arith.constant 0 : i32
    return %arg0, %c0_i32, %arg1, %c0_i32_0 : i32, i32, i32, i32
  }
  func.func @transform_3(%arg0: i32, %arg1: i32) -> (i32, i32, i32, i32) {
    %c0_i32 = arith.constant 0 : i32
    %c0_i32_0 = arith.constant 0 : i32
    %c0_i32_1 = arith.constant 0 : i32
    return %arg0, %c0_i32, %arg1, %c0_i32_0 : i32, i32, i32, i32
  }
}

</mosaic_0001>

<bundles_post_ra>
// kernel: tpu_custom_call.1
= control target key start
LH: loop header
LB: loop body
LE: loop exit
PB: predicated region body
PF: predicated region fallthrough
CT: control target
= control target key end

     0   :  { %9 = vsyncpa [#allocation3], 0  ;;  %s1134_s0 = inlined_call_operand.hbm [shape: f32[2,4,2,128], index: 0, kind: input, shape index: {}]   ;;  %s1135_s1 = inlined_call_operand.hbm [shape: f32[2,4,2,128], index: 1, kind: input, shape index: {}]   ;;  %s1136_s2 = inlined_call_operand.hbm [shape: f32[2,4,2,128], index: 2, kind: output, shape index: {0}]   ;;  %s1137_s3 = inlined_call_operand.hbm [shape: f32[2,4,2,128], index: 3, kind: output, shape index: {1}]  }
   0x1   :  { %11 = vsyncpa [#allocation3 + $0x1], 0 }
   0x2   :  { %12 = vsyncpa [#allocation6], 0 }
   0x3   :  { %14 = vsyncpa [#allocation6 + $0x1], 0 }
   0x4   :  { %15 = vsyncpa [#allocation4], 0 }
   0x5   :  { %17 = vsyncpa [#allocation4 + $0x1], 0 }
   0x6   :  { %18 = vsyncpa [#allocation9], 0 }
   0x7   :  { %20 = vsyncpa [#allocation9 + $0x1], 0  ;;  %s848_s12 = smov 0   ;;  %s850_s13 = smov 0  }
   0x8   :  { %s852_s14 = smov 0   ;;  %s854_s15 = smov 0  }
   0x9   :  { %s856_s16 = smov 0   ;;  %s858_s17 = smov 0  }
   0xa LB: > { %s515_s18 = sadd.s32 4294967295, %s818_s17   ;;  %s516_s19 = sadd.s32 4294967294, %s818_s17   ;;  %s818_s17 = sphi %s858_s17, %s26_s17   ;;  %s814_s16 = sphi %s856_s16, %s1155_s16   ;;  %s810_s15 = sphi %s854_s15, %s1154_s15   ;;  %s806_s14 = sphi %s852_s14, %s1153_s14   ;;  %s802_s13 = sphi %s850_s13, %s1152_s13   ;;  %s798_s12 = sphi %s848_s12, %s1151_s12  }
   0xb   : > { %s38_s20 = sadd.s32 1, %s814_s16  ;;  %s47_s21 = sadd.s32 1, %s806_s14 }
   0xc   : > { %p40_p0 = scmp.ge.s32.totalorder %s38_s20, 2  ;;  %p54_p1 = scmp.ne.s32.totalorder %s806_s14, %s802_s13 }
   0xd   : > { %p55_p2 = scmp.eq.s32.totalorder %s818_s17, 0  ;;  %p60_p3 = scmp.ne.s32.totalorder %s802_s13, %s798_s12 }
   0xe   : > { %s1157_s20 = smov (%p40_p0, %s38_s20), 0  ;;  %p61_p5 = scmp.eq.s32.totalorder %s515_s18, 0 }
   0xf   : > { %p889_p4 = por %p55_p2, %p54_p1  ;;  %s42_s23 = ssub.s32 %s814_s16, %s1157_s20 }
  0x10   : > { %p114_p6 = scmp.eq.s32.totalorder %s515_s18, 1  ;;  %p45_p7 = scmp.eq.s32.totalorder %s42_s23, 0 }
  0x11   : > { %p895_p8 = por %p61_p5, %p60_p3  ;;  %p120_p10 = scmp.eq.s32.totalorder %s516_s19, 1 }
  0x12   : > { %p899_p9 = por %p114_p6, %p54_p1  ;;  %p568_p13 = scmp.lt.s32.totalorder %s818_s17, 2 }
  0x13   : > { %s1141_s24 = scalar_select %p895_p8, 1, 0 }
  0x14   : > { %s1142_s25 = scalar_select %p899_p9, 1, 0 }
  0x15   : > { %s904_s26 = scalar_select %p45_p7, %s806_s14, %s47_s21  }
  0x16   : > { %p906_p11 = por %p120_p10, %p60_p3  ;;  %s913_s28 = sand.u32 1, %s806_s14  }
  0x17   : > { %s519_s29 = sshll.u32 %s913_s28, 3  ;;  %s542_s30 = sshll.u32 %s814_s16, 7 }
  0x18   : > { %s1143_s27 = scalar_select %p906_p11, 1, 0 }
  0x19   : > { %s922_s6 = scalar_lea.hbm %s1134_s0, %s542_s30  ;;  %s172_s7 = scalar_lea.vmem [#allocation2], %s519_s29 }
  0x1a   : > { %s180_s8 = sshll.u32 %s172_s7, 4  ;;  %p930_p0 = pnand %p568_p13, %p889_p4  ;;  %s926_s8 = int_to_ptr.vmem [resolvable:$true] %s180_s8 }
  0x1b   : > { %s169_s10 = scalar_lea.sflag [#allocation3], %s913_s28  ;;  %s640_s11 = scalar_lea.hbm %s922_s6, 128 }
  0x1c   : > { %p641_p2 = scmp.ne.s32.totalorder %s922_s6, %s640_s11  ;;  %p642_p3 = pneg %p930_p0 }
  0x1d   : > { %s645_s21 = scalar_lea.hbm %s1134_s0, 256  ;;  %p646_p4 = scmp.lt.u32.totalorder %s922_s6, %s1134_s0 }
  0x1e   : > { %p643_p5 = pnand %p642_p3, %p641_p2  ;;  %p647_p7 = scmp.lt.u32.totalorder %s645_s21, %s640_s11 }
  0x1f   : > { %p649_p13 = scmp.lt.u32.totalorder %s640_s11, %s922_s6 }
  0x20   : > { %p644_p6 = pneg %p643_p5  ;;  %p648_p10 = por %p647_p7, %p646_p4 }
  0x22   : > { %p650_p12 = por %p649_p13, %p648_p10 }
  0x24   : > { %p651_p1 = pnand %p650_p12, %p644_p6 }
  0x26   : > { %654 = shalt.err (!%p651_p1)
}
  0x27   : > { %s655_s4 = scalar_lea.vmem %s926_s8, 128  ;;  %s820_s5 = smov [#allocation2]  }
  0x28   : > { %p656_p2 = scmp.ne.s32.totalorder %s926_s8, %s655_s4  ;;  %s660_s7 = sshll.u32 %s820_s5, 4  ;;  %s661_s7 = int_to_ptr.vmem [resolvable:$false] %s660_s7 }
  0x29   : > { %s662_s18 = scalar_lea.vmem %s661_s7, 256  ;;  %p663_p9 = scmp.lt.s32.totalorder %s926_s8, %s661_s7 }
  0x2a   : > { %p658_p5 = pnand %p656_p2, %p642_p3  ;;  %p664_p4 = scmp.lt.s32.totalorder %s662_s18, %s655_s4 }
  0x2c   : > { %p659_p11 = pneg %p658_p5  ;;  %p665_p7 = por %p664_p4, %p663_p9 }
  0x2e   : > { %p666_p10 = pnand %p665_p7, %p659_p11 }
  0x30   : > { %669 = shalt.err (!%p666_p10)
}
  0x31   : > { %s821_s11 = smov 32   ;;  %s822_s19 = smov 2  }
  0x32   : > { %557 = dma.hbm_to_vmem [thread:$0]  (!%p930_p0), %s922_s6, 128, %s926_s8, %s169_s10, %s821_s11, %s821_s11, %s822_s19  }
  0x33   : > { %p210_p9 = scmp.lt.s32.totalorder %s818_s17, 3  ;;  %s972_s23 = scalar_lea.hbm %s1135_s1, %s542_s30 }
  0x34   : > { %p1145_p11 = scmp.ge.s32.totalorder %s818_s17, 1  ;;  %s194_s5 = scalar_lea.vmem [#allocation5], %s519_s29 }
  0x35   : > { %s202_s7 = sshll.u32 %s194_s5, 4  ;;  %s191_s6 = scalar_lea.sflag [#allocation6], %s913_s28  ;;  %s982_s7 = int_to_ptr.vmem [resolvable:$true] %s202_s7 }
  0x36   : > { %p976_p12 = pnand %p1145_p11, %p210_p9  ;;  %s670_s8 = scalar_lea.hbm %s972_s23, 128 }
  0x37   : > { %p671_p1 = scmp.ne.s32.totalorder %s972_s23, %s670_s8  ;;  %s675_s18 = scalar_lea.hbm %s1135_s1, 256 }
  0x38   : > { %p676_p2 = scmp.lt.u32.totalorder %s972_s23, %s1135_s1  ;;  %p677_p5 = scmp.lt.u32.totalorder %s675_s18, %s670_s8 }
  0x39   : > { %p673_p6 = pnand %p671_p1, %p642_p3  ;;  %p679_p7 = scmp.lt.u32.totalorder %s670_s8, %s972_s23 }
  0x3a   : > { %p678_p4 = por %p677_p5, %p676_p2 }
  0x3b   : > { %p674_p13 = pneg %p673_p6 }
  0x3c   : > { %p680_p10 = por %p679_p7, %p678_p4 }
  0x3e   : > { %p681_p9 = pnand %p680_p10, %p674_p13 }
  0x40   : > { %684 = shalt.err (!%p681_p9)
}
  0x41   : > { %s685_s29 = scalar_lea.vmem %s982_s7, 128  ;;  %s823_s5 = smov [#allocation5]  }
  0x42   : > { %p686_p11 = scmp.ne.s32.totalorder %s982_s7, %s685_s29  ;;  %s690_s30 = sshll.u32 %s823_s5, 4  ;;  %s691_s30 = int_to_ptr.vmem [resolvable:$false] %s690_s30 }
  0x43   : > { %s692_s10 = scalar_lea.vmem %s691_s30, 256  ;;  %p693_p8 = scmp.lt.s32.totalorder %s982_s7, %s691_s30 }
  0x44   : > { %p688_p1 = pnand %p686_p11, %p642_p3  ;;  %p694_p2 = scmp.lt.s32.totalorder %s692_s10, %s685_s29 }
  0x46   : > { %p689_p6 = pneg %p688_p1  ;;  %p695_p5 = por %p694_p2, %p693_p8 }
  0x48   : > { %p696_p4 = pnand %p695_p5, %p689_p6 }
  0x4a   : > { %699 = shalt.err (!%p696_p4)
}
  0x4b   : > { %560 = dma.hbm_to_vmem [thread:$0]  (!%p930_p0), %s972_s23, 128, %s982_s7, %s191_s6, %s821_s11, %s821_s11, %s822_s19  }
  0x4c   : > { %214 = sbr.rel (%p976_p12) target bundleno = 169 (0xa9), region = 28  ;;  %s1016_s8 = sand.u32 (!%p976_p12), 1, %s802_s13  }
  0x4d   : > { %s1019_s18 = sshll.u32 (!%p976_p12), %s1016_s8, 3  ;;  %s217_s9 = scalar_lea.sflag (!%p976_p12), [#allocation3], %s1016_s8 }
  0x4e   : > { %s220_s21 = scalar_lea.vmem (!%p976_p12), [#allocation2], %s1019_s18  ;;  %p1147_p8 = scmp.ne.s32.totalorder (!%p976_p12), %s1141_s24, 0 }
  0x53   : > { %781 = dma.done.wait (%p1147_p8), %s217_s9, 128  }
  0x54   : > { %783 = vsyncadd (%p1147_p8), %s217_s9, 4294967168  ;;  %s226_s28 = scalar_lea.sflag [#allocation6], %s1016_s8  ;;  %s229_s11 = scalar_lea.vmem [#allocation5], %s1019_s18 }
  0x55   : > { %785 = dma.done.wait (%p1147_p8), %s226_s28, 128  }
  0x56   : > { %787 = vsyncadd (%p1147_p8), %s226_s28, 4294967168  ;;  %v262_v0 = vld [vmem:[%s220_s21] sm:$0x3]  ;;  %v263_v1 = vld [vmem:[%s220_s21 + $0x2] sm:$0x3]  ;;  %vm306_vm0 = vcmask 1041408  }
  0x57   : > { %v264_v2 = vld [vmem:[%s220_s21 + $0x4] sm:$0x3]  ;;  %v265_v3 = vld [vmem:[%s220_s21 + $0x6] sm:$0x3]  ;;  %v266_v4 = vld [vmem:[%s229_s11] sm:$0x3] }
  0x58   : > { %v267_v5 = vld [vmem:[%s229_s11 + $0x2] sm:$0x3]  ;;  %v268_v6 = vld [vmem:[%s229_s11 + $0x4] sm:$0x3]  ;;  %v269_v7 = vld [vmem:[%s229_s11 + $0x6] sm:$0x3] }
  0x59   : > { %v270_v8 = vmul.f32 0.5, %v266_v4  ;;  %v271_v9 = vmul.f32 0.5, %v267_v5  ;;  %v272_v10 = vmul.f32 0.5, %v268_v6  ;;  %v273_v11 = vmul.f32 0.5, %v269_v7  ;;  %s254_s24 = scalar_lea.vmem [#allocation7], %s1019_s18  ;;  %s544_s23 = sshll.u32 %s810_s15, 7 }
  0x5a   : > { %v290_v20 = vmul.f32 1.442695, %v266_v4  ;;  %v292_v21 = vmul.f32 1.442695, %v267_v5  ;;  %v294_v22 = vmul.f32 1.442695, %v268_v6  ;;  %s1044_s29 = scalar_lea.hbm %s1136_s2, %s544_s23  ;;  %s1051_s30 = scalar_lea.hbm %s1137_s3, %s544_s23 }
  0x5b   : > { %v274_v12 = vadd.f32 %v270_v8, %v262_v0  ;;  %v275_v13 = vadd.f32 %v271_v9, %v263_v1  ;;  %v276_v14 = vadd.f32 %v272_v10, %v264_v2  ;;  %v277_v15 = vadd.f32 %v273_v11, %v265_v3  ;;  %s354_s19 = sshll.u32 %s254_s24, 4  ;;  %s1038_s4 = scalar_lea.vmem [#allocation8], %s1019_s18  ;;  %s1035_s19 = int_to_ptr.vmem [resolvable:$true] %s354_s19 }
  0x5c   : > { %v296_v24 = vmul.f32 1.442695, %v269_v7  ;;  %s371_s7 = sshll.u32 %s1038_s4, 4  ;;  %s335_s10 = scalar_lea.sflag [#allocation4], %s1016_s8  ;;  %s1046_s7 = int_to_ptr.vmem [resolvable:$true] %s371_s7 }
  0x5d   : > { %v278_v16 = vmul.f32 1.442695, %v274_v12  ;;  %v280_v17 = vmul.f32 1.442695, %v275_v13  ;;  %v282_v18 = vmul.f32 1.442695, %v276_v14 }
  0x5e   : > { %v284_v19 = vmul.f32 1.442695, %v277_v15  ;;  %s700_s18 = scalar_lea.vmem %s1035_s19, 128  ;;  %p1148_p3 = scmp.ne.s32.totalorder %s1142_s25, 0 }
  0x5f   : > { %622 = vpow2.f32 %v278_v16  ;;  %p701_p0 = scmp.ne.s32.totalorder %s1035_s19, %s700_s18  ;;  %s824_s9 = smov [#allocation7]  }
  0x60   : > { %624 = vpow2.f32 %v280_v17  ;;  %s704_s21 = sshll.u32 %s824_s9, 4  ;;  %s705_s21 = int_to_ptr.vmem [resolvable:$false] %s704_s21 }
  0x61   : > { %626 = vpow2.f32 %v282_v18  ;;  %p702_p12 = pnand %p701_p0, %p1148_p3  ;;  %s706_s28 = scalar_lea.vmem %s705_s21, 256 }
  0x62   : > { %628 = vpow2.f32 %v284_v19  ;;  %p707_p7 = scmp.lt.s32.totalorder %s1035_s19, %s705_s21  ;;  %p708_p10 = scmp.lt.s32.totalorder %s706_s28, %s700_s18 }
  0x63   : > { %630 = vpow2.f32 %v290_v20  ;;  %p703_p13 = pneg %p702_p12 }
  0x64   : > { %632 = vpow2.f32 %v292_v21  ;;  %p709_p9 = por %p708_p10, %p707_p7 }
  0x65   : > { %634 = vpow2.f32 %v294_v22 }
  0x66   : > { %636 = vpow2.f32 %v296_v24  ;;  %p710_p11 = pnand %p709_p9, %p703_p13 }
  0x69   : > { %v623_v23 = vpop.eup %622 }
  0x6a   : > { %v625_v25 = vpop.eup %624  ;;  %v307_v26 = vsel %vm306_vm0, %v623_v23, 0.0  ;;  %v286_v40 = vmul.f32 %v623_v23, %v623_v23 }
  0x6b   : > { %v627_v27 = vpop.eup %626  ;;  %v308_v28 = vsel %vm306_vm0, %v625_v25, 0.0  ;;  %v287_v44 = vmul.f32 %v625_v25, %v625_v25 }
  0x6c   : > { %v629_v29 = vpop.eup %628  ;;  %v309_v30 = vadd.f32 %v308_v28, %v307_v26  ;;  %v310_v31 = vsel %vm306_vm0, %v627_v27, 0.0  ;;  %v288_v45 = vmul.f32 %v627_v27, %v627_v27 }
  0x6d   : > { %v312_v32 = vsel %vm306_vm0, %v629_v29, 0.0  ;;  %v631_v36 = vpop.eup %630  ;;  %v289_v46 = vmul.f32 %v629_v29, %v629_v29 }
  0x6e   : > { %v311_v33 = vadd.f32 %v310_v31, %v309_v30  ;;  %v633_v37 = vpop.eup %632  ;;  %v530_v41 = vadd.f32 -1.0, %v631_v36 }
  0x6f   : > { %v635_v38 = vpop.eup %634  ;;  %v531_v42 = vadd.f32 -1.0, %v633_v37 }
  0x70   : > { %v313_v34 = vadd.f32 %v312_v32, %v311_v33  ;;  %v637_v39 = vpop.eup %636  ;;  %v532_v43 = vadd.f32 -1.0, %v635_v38  ;;  %v302_v49 = vmul.f32 %v530_v41, %v286_v40 }
  0x71   : > { %v533_v47 = vadd.f32 -1.0, %v637_v39  ;;  %v303_v50 = vmul.f32 %v531_v42, %v287_v44 }
  0x72   : > { %v314_v35 = vadd.f32 1e-05, %v313_v34  ;;  %v304_v51 = vmul.f32 %v532_v43, %v288_v45 }
  0x73   : > { %v305_v52 = vmul.f32 %v533_v47, %v289_v46 }
  0x74   : > { %638 = vrcp.f32 %v314_v35 }
  0x7e   : > { %v639_v48 = vpop.eup %638 }
  0x7f   : > { %v318_v53 = vmul.f32 %v639_v48, %v623_v23  ;;  %v319_v54 = vmul.f32 %v639_v48, %v625_v25  ;;  %v320_v55 = vmul.f32 %v639_v48, %v627_v27  ;;  %v321_v56 = vmul.f32 %v639_v48, %v629_v29 }
  0x80   : > { %v317_v57 = vmul.f32 %v639_v48, %v639_v48 }
  0x81   : > { %322 = vst [vmem:[%s254_s24] sm:$0x3] %v318_v53  ;;  %323 = vst [vmem:[%s254_s24 + $0x2] sm:$0x3] %v319_v54 }
  0x82   : > { %324 = vst [vmem:[%s254_s24 + $0x4] sm:$0x3] %v320_v55  ;;  %325 = vst [vmem:[%s254_s24 + $0x6] sm:$0x3] %v321_v56  ;;  %v326_v58 = vmul.f32 %v317_v57, %v302_v49  ;;  %v327_v59 = vmul.f32 %v317_v57, %v303_v50  ;;  %v328_v60 = vmul.f32 %v317_v57, %v304_v51 }
  0x83   : > { %v329_v61 = vmul.f32 %v317_v57, %v305_v52 }
  0x84   : > { %713 = shalt.err (!%p710_p11)
}
  0x85   : > { %s714_s11 = scalar_lea.hbm %s1044_s29, 128  ;;  %s718_s6 = scalar_lea.hbm %s1136_s2, 256 }
  0x86   : > { %p715_p1 = scmp.ne.s32.totalorder %s1044_s29, %s714_s11  ;;  %p719_p5 = scmp.lt.u32.totalorder %s1044_s29, %s1136_s2 }
  0x87   : > { %p720_p4 = scmp.lt.u32.totalorder %s718_s6, %s714_s11  ;;  %p722_p0 = scmp.lt.u32.totalorder %s714_s11, %s1044_s29 }
  0x88   : > { %p716_p6 = pnand %p715_p1, %p1148_p3 }
  0x89   : > { %p721_p8 = por %p720_p4, %p719_p5 }
  0x8a   : > { %p717_p2 = pneg %p716_p6 }
  0x8b   : > { %p723_p12 = por %p722_p0, %p721_p8 }
  0x8d   : > { %p724_p13 = pnand %p723_p12, %p717_p2 }
  0x8f   : > { %727 = shalt.err (!%p724_p13)
}
  0x90   : > { %s825_s5 = smov 32   ;;  %s826_s18 = smov 2   ;;  %330 = vst [vmem:[%s1038_s4] sm:$0x3] %v326_v58  ;;  %331 = vst [vmem:[%s1038_s4 + $0x2] sm:$0x3] %v327_v59 }
  0x91   : > { %550 = dma.vmem_to_hbm [thread:$0]  (%p1148_p3), %s1035_s19, 128, %s1044_s29, %s335_s10, %s825_s5, %s825_s5, %s826_s18  }
  0x92   : > { %332 = vst [vmem:[%s1038_s4 + $0x4] sm:$0x3] %v328_v60  ;;  %333 = vst [vmem:[%s1038_s4 + $0x6] sm:$0x3] %v329_v61  ;;  %s340_s9 = scalar_lea.sflag [#allocation9], %s1016_s8  ;;  %s728_s21 = scalar_lea.vmem %s1046_s7, 128 }
  0x93   : > { %p729_p7 = scmp.ne.s32.totalorder %s1046_s7, %s728_s21  ;;  %s827_s28 = smov [#allocation8]  }
  0x94   : > { %s732_s11 = sshll.u32 %s827_s28, 4  ;;  %s733_s11 = int_to_ptr.vmem [resolvable:$false] %s732_s11 }
  0x95   : > { %p730_p10 = pnand %p729_p7, %p1148_p3  ;;  %s734_s24 = scalar_lea.vmem %s733_s11, 256 }
  0x96   : > { %p735_p11 = scmp.lt.s32.totalorder %s1046_s7, %s733_s11  ;;  %p736_p1 = scmp.lt.s32.totalorder %s734_s24, %s728_s21 }
  0x97   : > { %p731_p9 = pneg %p730_p10 }
  0x98   : > { %p737_p6 = por %p736_p1, %p735_p11 }
  0x9a   : > { %p738_p2 = pnand %p737_p6, %p731_p9 }
  0x9c   : > { %741 = shalt.err (!%p738_p2)
}
  0x9d   : > { %s742_s19 = scalar_lea.hbm %s1051_s30, 128  ;;  %s746_s10 = scalar_lea.hbm %s1137_s3, 256 }
  0x9e   : > { %p743_p5 = scmp.ne.s32.totalorder %s1051_s30, %s742_s19  ;;  %p747_p0 = scmp.lt.u32.totalorder %s1051_s30, %s1137_s3 }
  0x9f   : > { %p748_p12 = scmp.lt.u32.totalorder %s746_s10, %s742_s19  ;;  %p750_p7 = scmp.lt.u32.totalorder %s742_s19, %s1051_s30 }
  0xa0   : > { %p744_p4 = pnand %p743_p5, %p1148_p3 }
  0xa1   : > { %p749_p13 = por %p748_p12, %p747_p0 }
  0xa2   : > { %p745_p8 = pneg %p744_p4 }
  0xa3   : > { %p751_p10 = por %p750_p7, %p749_p13 }
  0xa5   : > { %p752_p9 = pnand %p751_p10, %p745_p8 }
  0xa7   : > { %755 = shalt.err (!%p752_p9)
}
  0xa8   : > { %551 = dma.vmem_to_hbm [thread:$0]  (%p1148_p3), %s1046_s7, 128, %s1051_s30, %s340_s9, %s825_s5, %s825_s5, %s826_s18  }
  0xa9 PF: > { %s386_s22 = sand.u32 1, %s798_s12   ;;  %p1149_p11 = scmp.ne.s32.totalorder %s1143_s27, 0 }
  0xaa   : > { %p1150_p1 = scmp.ge.s32.totalorder %s818_s17, 2  ;;  %s387_s15 = scalar_lea.sflag [#allocation4], %s386_s22 }
  0xac   : > { %p562_p6 = pnand %p1150_p1, %p1149_p11 }
  0xae   : > { %789 = dma.done.wait (!%p562_p6), %s387_s15, 128  }
  0xaf   : > { %791 = vsyncadd (!%p562_p6), %s387_s15, 4294967168  ;;  %s396_s25 = scalar_lea.sflag [#allocation9], %s386_s22 }
  0xb0   : > { %793 = dma.done.wait (!%p562_p6), %s396_s25, 128  }
  0xb1   : > { %795 = vsyncadd (!%p562_p6), %s396_s25, 4294967168  ;;  %s26_s17 = sadd.s32 1, %s818_s17   ;;  %s1151_s12 = smov %s802_s13 }
  0xb2   : > { %p23_p2 = scmp.ge.s32.totalorder %s26_s17, 4   ;;  %s1152_s13 = smov %s806_s14 }
  0xb3   : > { %s1153_s14 = smov %s904_s26  ;;  %s1154_s15 = smov %s814_s16 }
  0xb4   : > { %s1155_s16 = smov %s1157_s20  ;;  %25 = sbr.rel (!%p23_p2) target bundleno = 10 (0xa), region = 103 }
  0xbb   :  { %401 = vsyncpa [#allocation3], 1 }
  0xbc   :  { %403 = vsyncpa [#allocation3 + $0x1], 1 }
  0xbd   :  { %404 = vsyncpa [#allocation6], 1 }
  0xbe   :  { %406 = vsyncpa [#allocation6 + $0x1], 1 }
  0xbf   :  { %407 = vsyncpa [#allocation4], 1 }
  0xc0   :  { %409 = vsyncpa [#allocation4 + $0x1], 1 }
  0xc1   :  { %410 = vsyncpa [#allocation9], 1 }
  0xc2   :  { %412 = vsyncpa [#allocation9 + $0x1], 1 }

</bundles_post_ra>
